<compile_context>
chip_gen: v5e
topology: v5e:2x2
jax: 0.10.0
libtpu: 0.0.40
codegen_flags: <defaults>
</compile_context>

<pallas_src>
import functools

import jax
import jax.numpy as jnp
from jax.experimental import pallas as pl
from jax.experimental.pallas import tpu as pltpu


def _round_up(x, m):
    return (x + m - 1) // m * m


# ----------------------------- Pallas kernel --------------------------------

def _proposal_kernel(cols_ref, w1_ref, b1_ref, w2_ref, b2_ref, o_ref, acc_ref):
    """out = (relu(cols @ w1 + b1)) @ w2 + b2, reduction over grid axis 1."""
    @pl.when(pl.program_id(1) == 0)
    def _():
        acc_ref[...] = jnp.zeros_like(acc_ref)

    # bf16 x bf16 -> f32 accumulate on the MXU.
    acc_ref[...] += jnp.dot(cols_ref[...], w1_ref[...],
                            preferred_element_type=jnp.float32)

    @pl.when(pl.program_id(1) == pl.num_programs(1) - 1)
    def _():
        d1 = jnp.maximum(acc_ref[...] + b1_ref[...], 0.0)          # bias + ReLU
        out = jnp.dot(d1.astype(w2_ref.dtype), w2_ref[...],        # 1x1 conv
                      preferred_element_type=jnp.float32) + b2_ref[...]
        o_ref[...] = out.astype(o_ref.dtype)


@functools.lru_cache(maxsize=None)
def _build_proposal_call(Mp, Kp, N1p, N2p, tm, tk):
    call = pl.pallas_call(
        _proposal_kernel,
        out_shape=jax.ShapeDtypeStruct((Mp, N2p), jnp.float32),
        grid_spec=pltpu.PrefetchScalarGridSpec(
            num_scalar_prefetch=0,
            grid=(Mp // tm, Kp // tk),
            in_specs=[
                pl.BlockSpec((tm, tk), lambda i, k: (i, k)),     # im2col (bf16)
                pl.BlockSpec((tk, N1p), lambda i, k: (k, 0)),    # conv1 W (bf16)
                pl.BlockSpec((1, N1p), lambda i, k: (0, 0)),     # conv1 b (f32)
                pl.BlockSpec((N1p, N2p), lambda i, k: (0, 0)),   # conv2 W (bf16)
                pl.BlockSpec((1, N2p), lambda i, k: (0, 0)),     # conv2 b (f32)
            ],
            out_specs=pl.BlockSpec((tm, N2p), lambda i, k: (i, 0)),
            scratch_shapes=[pltpu.VMEM((tm, N1p), jnp.float32)],
        ),
        compiler_params=pltpu.CompilerParams(
            dimension_semantics=("parallel", "arbitrary")),
    )
    return jax.jit(call)


# ----------------------------- parameters -----------------------------------

def make_proposal_params(inp, key):
    """Random-init ProposalNet params, pre-padded/transposed for the kernel.

    Conv1 weight layout: PyTorch (Cout,Cin,3,3) -> (3,3,Cin,Cout) -> (9*Cin, Cout),
    matching the im2col tap order used in the forward pass below.
    """
    cout1 = inp // 2
    K = 9 * inp
    k1, k2, k3, k4 = jax.random.split(key, 4)

    # PyTorch nn.Conv2d default init: U(-1/sqrt(fan_in), 1/sqrt(fan_in)).
    bnd1 = 1.0 / (K ** 0.5)
    w1 = jax.random.uniform(k1, (3, 3, inp, cout1), jnp.float32, -bnd1, bnd1)
    b1 = jax.random.uniform(k2, (cout1,), jnp.float32, -bnd1, bnd1)
    bnd2 = 1.0 / (cout1 ** 0.5)
    w2 = jax.random.uniform(k3, (cout1, 6), jnp.float32, -bnd2, bnd2)
    b2 = jax.random.uniform(k4, (6,), jnp.float32, -bnd2, bnd2)

    Kp = _round_up(K, 128)
    if Kp > 512:                       # multi-step reduction with tk = 512
        Kp = _round_up(K, 512)
    N1p = _round_up(cout1, 128)
    N2p = 128                          # 6 output channels, padded lane-dense

    w1m = jnp.zeros((Kp, N1p), jnp.float32).at[:K, :cout1].set(w1.reshape(K, cout1))
    b1m = jnp.zeros((1, N1p), jnp.float32).at[0, :cout1].set(b1)
    w2m = jnp.zeros((N1p, N2p), jnp.float32).at[:cout1, :6].set(w2)
    b2m = jnp.zeros((1, N2p), jnp.float32).at[0, :6].set(b2)

    return {'w1': w1m.astype(jnp.bfloat16), 'b1': b1m,
            'w2': w2m.astype(jnp.bfloat16), 'b2': b2m}


# ----------------------------- forward ---------------------------------------

@jax.jit
def proposal_net_forward(x_nchw, params):
    """ProposalNet forward. x_nchw: (N, Cin, H, W) f32 -> (N, 6*H*W) f32."""
    N, Cin, H, W = x_nchw.shape
    x = jnp.transpose(x_nchw, (0, 2, 3, 1))                       # NHWC
    xp = jnp.pad(x, ((0, 0), (1, 1), (1, 1), (0, 0)))
    taps = [xp[:, i:i + H, j:j + W, :] for i in range(3) for j in range(3)]
    cols = jnp.concatenate(taps, axis=-1).reshape(N * H * W, 9 * Cin)
    cols = cols.astype(jnp.bfloat16)                              # bf16 MXU feed

    M, K = N * H * W, 9 * Cin
    Kp, N1p = params['w1'].shape
    N2p = params['w2'].shape[1]
    tk = Kp if Kp <= 512 else 512                                 # 1 k-step if small
    if M <= 256:
        Mp = _round_up(M, 16)
        tm = Mp
    else:
        tm = 256                                                  # >=2 parallel blocks
        Mp = _round_up(M, tm)
    cols = jnp.pad(cols, ((0, Mp - M), (0, Kp - K)))

    out = _build_proposal_call(Mp, Kp, N1p, N2p, tm, tk)(
        cols, params['w1'], params['b1'], params['w2'], params['b2'])

    t1 = out[:M, :6].reshape(N, H, W, 6)
    # PyTorch's .view(batch, -1) flattens NCHW channel-major.
    return jnp.transpose(t1, (0, 3, 1, 2)).reshape(N, -1)


# ----------------------------- reference (pure JAX) ---------------------------

def reference_forward(x_nchw, params, inp):
    """Plain-XLA reference using the same (bf16-quantized) weights."""
    cout1, K = inp // 2, 9 * inp
    w1 = params['w1'][:K, :cout1].astype(jnp.float32).reshape(3, 3, inp, cout1)
    b1 = params['b1'][0, :cout1]
    w2 = params['w2'][:cout1, :6].astype(jnp.float32)
    b2 = params['b2'][0, :6]
    d1 = jax.lax.conv_general_dilated(
        x_nchw, jnp.transpose(w1, (3, 2, 0, 1)),                  # OIHW
        window_strides=(1, 1), padding=((1, 1), (1, 1)),
        dimension_numbers=('NCHW', 'OIHW', 'NCHW'))
    d1 = jnp.maximum(d1 + b1[None, :, None, None], 0.0)
    t1 = jnp.einsum('nchw,cd->ndhw', d1, w2) + b2[None, :, None, None]
    return t1.reshape(x_nchw.shape[0], -1)


if __name__ == "__main__":
    key = jax.random.PRNGKey(0)
    kx, kp = jax.random.split(key)
    N, inp, H, W = 2, 32, 16, 16                                  # small test shapes
    x = jax.random.normal(kx, (N, inp, H, W), jnp.float32)
    params = make_proposal_params(inp, kp)

    out = jax.block_until_ready(proposal_net_forward(x, params))
    assert out.shape == (N, 6 * H * W), out.shape
    assert bool(jnp.isfinite(out).all())

    ref = reference_forward(x, params, inp)
    max_err = float(jnp.max(jnp.abs(out - ref)))
    assert max_err < 5e-2, max_err                                # bf16 MXU tolerance

    print("KERNEL_OK")
</pallas_src>

<mosaic_0001>
module attributes {stable_mosaic.version = 11 : i64} {
  func.func @_proposal_kernel(%arg0: i32, %arg1: i32, %arg2: memref<256x384xbf16, #tpu.memory_space<vmem>>, %arg3: memref<384x128xbf16, #tpu.memory_space<vmem>>, %arg4: memref<1x128xf32, #tpu.memory_space<vmem>>, %arg5: memref<128x128xbf16, #tpu.memory_space<vmem>>, %arg6: memref<1x128xf32, #tpu.memory_space<vmem>>, %arg7: memref<256x128xf32, #tpu.memory_space<vmem>>, %arg8: memref<256x128xf32, #tpu.memory_space<vmem>>) attributes {dimension_semantics = [#tpu.dimension_semantics<parallel>, #tpu.dimension_semantics<arbitrary>], iteration_bounds = array<i64: 2, 1>, scalar_prefetch = 0 : i64, scratch_operands = 1 : i64, tpu.core_type = #tpu.core_type<tc>, window_params = [{transform_indices = @transform_0, window_bounds = array<i64: 256, 384>}, {transform_indices = @transform_1, window_bounds = array<i64: 384, 128>}, {pipeline_mode = #tpu.pipeline_mode<synchronous>, transform_indices = @transform_2, window_bounds = array<i64: 1, 128>}, {pipeline_mode = #tpu.pipeline_mode<synchronous>, transform_indices = @transform_3, window_bounds = array<i64: 128, 128>}, {pipeline_mode = #tpu.pipeline_mode<synchronous>, transform_indices = @transform_4, window_bounds = array<i64: 1, 128>}, {transform_indices = @transform_5, window_bounds = array<i64: 256, 128>}]} {
    %c0_i32 = arith.constant 0 : i32
    %0 = arith.cmpi eq, %arg1, %c0_i32 : i32
    %1 = arith.extui %0 : i1 to i32
    %c0_i32_0 = arith.constant 0 : i32
    %2 = arith.cmpi ne, %1, %c0_i32_0 : i32
    scf.if %2 {
      %cst_10 = arith.constant 0.000000e+00 : f32
      %12 = vector.broadcast %cst_10 : f32 to vector<256x128xf32>
      %c0_11 = arith.constant 0 : index
      %c0_12 = arith.constant 0 : index
      %13 = vector.load %arg8[%c0_11, %c0_12] : memref<256x128xf32, #tpu.memory_space<vmem>>, vector<256x128xf32>
      tpu.vector_store %arg8[%c0_11, %c0_12], %12 {strides = array<i32>} : memref<256x128xf32, #tpu.memory_space<vmem>>, vector<256x128xf32>,
    } else {
    }
    %c0 = arith.constant 0 : index
    %c0_1 = arith.constant 0 : index
    %3 = vector.load %arg8[%c0, %c0_1] : memref<256x128xf32, #tpu.memory_space<vmem>>, vector<256x128xf32>
    %c0_2 = arith.constant 0 : index
    %c0_3 = arith.constant 0 : index
    %4 = vector.load %arg2[%c0_2, %c0_3] : memref<256x384xbf16, #tpu.memory_space<vmem>>, vector<256x384xbf16>
    %c0_4 = arith.constant 0 : index
    %c0_5 = arith.constant 0 : index
    %5 = vector.load %arg3[%c0_4, %c0_5] : memref<384x128xbf16, #tpu.memory_space<vmem>>, vector<384x128xbf16>
    %cst = arith.constant dense<0.000000e+00> : vector<256x128xf32>
    %6 = tpu.matmul %4, %5, %cst {dimension_numbers = #tpu.dot_dimension_numbers<[1], [0], [0], [1], [0, 0, 1, 1], [], []>} : vector<256x384xbf16>, vector<384x128xbf16>, vector<256x128xf32> -> vector<256x128xf32>
    %7 = arith.addf %3, %6 : vector<256x128xf32>
    %c0_6 = arith.constant 0 : index
    %c0_7 = arith.constant 0 : index
    %8 = vector.load %arg8[%c0_6, %c0_7] : memref<256x128xf32, #tpu.memory_space<vmem>>, vector<256x128xf32>
    tpu.vector_store %arg8[%c0_6, %c0_7], %7 {strides = array<i32>} : memref<256x128xf32, #tpu.memory_space<vmem>>, vector<256x128xf32>,
    %c0_i32_8 = arith.constant 0 : i32
    %9 = arith.cmpi eq, %arg1, %c0_i32_8 : i32
    %10 = arith.extui %9 : i1 to i32
    %c0_i32_9 = arith.constant 0 : i32
    %11 = arith.cmpi ne, %10, %c0_i32_9 : i32
    scf.if %11 {
      %c0_10 = arith.constant 0 : index
      %c0_11 = arith.constant 0 : index
      %12 = vector.load %arg8[%c0_10, %c0_11] : memref<256x128xf32, #tpu.memory_space<vmem>>, vector<256x128xf32>
      %c0_12 = arith.constant 0 : index
      %c0_13 = arith.constant 0 : index
      %13 = vector.load %arg4[%c0_12, %c0_13] : memref<1x128xf32, #tpu.memory_space<vmem>>, vector<1x128xf32>
      %14 = vector.broadcast %13 : vector<1x128xf32> to vector<256x128xf32>
      %15 = arith.addf %12, %14 : vector<256x128xf32>
      %cst_14 = arith.constant 0.000000e+00 : f32
      %16 = vector.broadcast %cst_14 : f32 to vector<256x128xf32>
      %17 = arith.maximumf %15, %16 : vector<256x128xf32>
      %18 = arith.truncf %17 : vector<256x128xf32> to vector<256x128xbf16>
      %c0_15 = arith.constant 0 : index
      %c0_16 = arith.constant 0 : index
      %19 = vector.load %arg5[%c0_15, %c0_16] : memref<128x128xbf16, #tpu.memory_space<vmem>>, vector<128x128xbf16>
      %cst_17 = arith.constant dense<0.000000e+00> : vector<256x128xf32>
      %20 = tpu.matmul %18, %19, %cst_17 {dimension_numbers = #tpu.dot_dimension_numbers<[1], [0], [0], [1], [0, 0, 1, 1], [], []>} : vector<256x128xbf16>, vector<128x128xbf16>, vector<256x128xf32> -> vector<256x128xf32>
      %c0_18 = arith.constant 0 : index
      %c0_19 = arith.constant 0 : index
      %21 = vector.load %arg6[%c0_18, %c0_19] : memref<1x128xf32, #tpu.memory_space<vmem>>, vector<1x128xf32>
      %22 = vector.broadcast %21 : vector<1x128xf32> to vector<256x128xf32>
      %23 = arith.addf %20, %22 : vector<256x128xf32>
      %c0_20 = arith.constant 0 : index
      %c0_21 = arith.constant 0 : index
      %24 = vector.load %arg7[%c0_20, %c0_21] : memref<256x128xf32, #tpu.memory_space<vmem>>, vector<256x128xf32>
      tpu.vector_store %arg7[%c0_20, %c0_21], %23 {strides = array<i32>} : memref<256x128xf32, #tpu.memory_space<vmem>>, vector<256x128xf32>,
    } else {
    }
    return
  }
  func.func @transform_0(%arg0: i32, %arg1: i32) -> (i32, i32) {
    %c0_i32 = arith.constant 0 : i32
    return %arg0, %arg1 : i32, i32
  }
  func.func @transform_1(%arg0: i32, %arg1: i32) -> (i32, i32) {
    %c0_i32 = arith.constant 0 : i32
    %c0_i32_0 = arith.constant 0 : i32
    return %arg1, %c0_i32 : i32, i32
  }
  func.func @transform_2(%arg0: i32, %arg1: i32) -> (i32, i32) {
    %c0_i32 = arith.constant 0 : i32
    %c0_i32_0 = arith.constant 0 : i32
    %c0_i32_1 = arith.constant 0 : i32
    return %c0_i32, %c0_i32_0 : i32, i32
  }
  func.func @transform_3(%arg0: i32, %arg1: i32) -> (i32, i32) {
    %c0_i32 = arith.constant 0 : i32
    %c0_i32_0 = arith.constant 0 : i32
    %c0_i32_1 = arith.constant 0 : i32
    return %c0_i32, %c0_i32_0 : i32, i32
  }
  func.func @transform_4(%arg0: i32, %arg1: i32) -> (i32, i32) {
    %c0_i32 = arith.constant 0 : i32
    %c0_i32_0 = arith.constant 0 : i32
    %c0_i32_1 = arith.constant 0 : i32
    return %c0_i32, %c0_i32_0 : i32, i32
  }
  func.func @transform_5(%arg0: i32, %arg1: i32) -> (i32, i32) {
    %c0_i32 = arith.constant 0 : i32
    %c0_i32_0 = arith.constant 0 : i32
    return %arg0, %c0_i32 : i32, i32
  }
}

</mosaic_0001>

<bundles_post_ra>
// kernel: tpu_custom_call.1
= control target key start
LH: loop header
LB: loop body
LE: loop exit
PB: predicated region body
PF: predicated region fallthrough
CT: control target
= control target key end

     0   :  { %s2730_s0 = inlined_call_operand.hbm [shape: bf16[512,384], index: 0, kind: input, shape index: {}]   ;;  %s2731_s1 = inlined_call_operand.hbm [shape: bf16[384,128], index: 1, kind: input, shape index: {}]   ;;  %s2732_s2 = inlined_call_operand.vmem [shape: f32[1,128], index: 2, kind: input, shape index: {}]   ;;  %s2733_s3 = inlined_call_operand.hbm [shape: bf16[128,128], index: 3, kind: input, shape index: {}]   ;;  %s2734_s4 = inlined_call_operand.vmem [shape: f32[1,128], index: 4, kind: input, shape index: {}]   ;;  %s2735_s5 = inlined_call_operand.hbm [shape: f32[512,128], index: 5, kind: output, shape index: {}]  }
   0x1   :  { %2736 = sst [smem:[#allocation13_spill]] %s2731_s1 }
   0x2   :  { %2737 = sst [smem:[#allocation14_spill]] %s2733_s3 }
   0x3   :  { %10 = vsyncpa [#allocation4], 0 }
   0x4   :  { %12 = vsyncpa [#allocation4 + $0x1], 0 }
   0x5   :  { %13 = vsyncpa [#allocation7], 0 }
   0x6   :  { %14 = vsyncpa [#allocation5], 0 }
   0x7   :  { %16 = vsyncpa [#allocation5 + $0x1], 0  ;;  %s2376_s18 = smov 0   ;;  %s2378_s19 = smov 0  }
   0x8   :  { %s2380_s20 = smov 0   ;;  %s2382_s21 = smov 0  }
   0x9   :  { %s2384_s22 = smov 0   ;;  %s2386_s23 = smov 0  }
   0xa LB: > { %s1647_s24 = sadd.s32 4294967295, %s2336_s23   ;;  %s1648_s25 = sadd.s32 4294967294, %s2336_s23   ;;  %s2336_s23 = sphi %s2386_s23, %s22_s23   ;;  %s2332_s22 = sphi %s2384_s22, %s2750_s22   ;;  %s2328_s21 = sphi %s2382_s21, %s2749_s21   ;;  %s2324_s20 = sphi %s2380_s20, %s2748_s20   ;;  %s2320_s19 = sphi %s2378_s19, %s2747_s19   ;;  %s2316_s18 = sphi %s2376_s18, %s2746_s18  }
   0xb   : > { %p56_p0 = scmp.ne.s32.totalorder %s2320_s19, %s2316_s18  ;;  %p2410_p1 = scmp.eq.s32.totalorder %s1647_s24, 0 }
   0xc   : > { %p2414_p2 = scmp.eq.s32.totalorder %s1647_s24, 1  ;;  %p175_p3 = scmp.eq.s32.totalorder %s1648_s25, 1 }
   0xd   : > { %p2420_p4 = por %p2410_p1, %p56_p0  ;;  %p1649_p5 = scmp.ge.s32.totalorder %s2336_s23, 1 }
   0xe   : > { %p2425_p6 = por %p175_p3, %p56_p0  ;;  %p182_p7 = scmp.lt.s32.totalorder %s2336_s23, 3 }
   0xf   : > { %s2742_s1 = sld [smem:[#allocation13_spill]]  ;;  %s2338_s9 = smov [#allocation6]  }
  0x10   : > { %p2433_p8 = pnand %p1649_p5, %p182_p7  ;;  %s198_s10 = sshll.u32 %s2338_s9, 4  ;;  %s199_s10 = int_to_ptr.vmem [resolvable:$true] %s198_s10 }
  0x11   : > { %p1652_p11 = scmp.ge.s32.totalorder %s2336_s23, 2  ;;  %s2744_s3 = sld [smem:[#allocation14_spill]] }
  0x12   : > { %p2081_p9 = pneg %p2433_p8  ;;  %s2339_s14 = smov 64  }
  0x13   : > { %s2340_s15 = smov 4   ;;  %s2341_s16 = smov [#allocation8]  }
  0x14   : > { %p2082_p10 = pnand %p2081_p9, %p2410_p1  ;;  %s215_s17 = sshll.u32 %s2341_s16, 4  ;;  %s216_s17 = int_to_ptr.vmem [resolvable:$true] %s215_s17 }
  0x15   : > { %s196_s7 = sshll.u32 %s2742_s1, 4  ;;  %s34_s24 = sadd.s32 1, %s2332_s22  ;;  %s197_s7 = int_to_ptr.hbm [resolvable:$true] %s196_s7 }
  0x16   : > { %2084 = dma.hbm_to_vmem [thread:$0]  (!%p2082_p10), %s197_s7, 3072, %s199_s10, [#allocation7], %s2339_s14, %s2339_s14, %s2340_s15  }
  0x17   : > { %s213_s13 = sshll.u32 %s2744_s3, 4  ;;  %s43_s25 = sadd.s32 1, %s2324_s20  ;;  %s214_s13 = int_to_ptr.hbm [resolvable:$true] %s213_s13 }
  0x18   : > { %2087 = dma.hbm_to_vmem [thread:$0]  (!%p2082_p10), %s214_s13, 1024, %s216_s17, [#allocation7], %s2339_s14, %s2339_s14, %s2340_s15  }
  0x19   : > { %p36_p12 = scmp.ge.s32.totalorder %s34_s24, 2  ;;  %p50_p13 = scmp.ne.s32.totalorder %s2324_s20, %s2320_s19 }
  0x1a   : > { %p51_p0 = scmp.eq.s32.totalorder %s2336_s23, 0  ;;  %p2098_p3 = scmp.lt.s32.totalorder %s2336_s23, 2 }
  0x1b   : > { %s2752_s24 = smov (%p36_p12, %s34_s24), 0  ;;  %p2455_p7 = por %p2414_p2, %p50_p13 }
  0x1c   : > { %p52_p5 = por %p51_p0, %p50_p13  ;;  %s38_s6 = ssub.s32 %s2332_s22, %s2752_s24 }
  0x1d   : > { %s232_s7 = sand.u32 1, %s2324_s20   ;;  %p41_p9 = scmp.eq.s32.totalorder %s38_s6, 0 }
  0x1e   : > { %s2066_s9 = smul.u32 384, %s232_s7  ;;  %p2089_p10 = pnand %p2098_p3, %p52_p5 }
  0x1f   : > { %s2463_s10 = scalar_select %p41_p9, %s2324_s20, %s43_s25  }
  0x20   : > { %s2067_s11 = smul.u32 384, %s2332_s22  ;;  %s236_s12 = scalar_lea.vmem [#allocation3], %s2066_s9 }
  0x21   : > { %s247_s13 = sshll.u32 %s236_s12, 4  ;;  %s233_s17 = scalar_lea.sflag [#allocation4], %s232_s7  ;;  %s248_s13 = int_to_ptr.vmem [resolvable:$true] %s247_s13 }
  0x22   : > { %s244_s16 = scalar_lea.hbm %s2730_s0, %s2067_s11  ;;  %s2342_s1 = smov 192  }
  0x23   : > { %s245_s27 = sshll.u32 %s244_s16, 4  ;;  %s2343_s3 = smov 12   ;;  %s246_s27 = int_to_ptr.hbm [resolvable:$true] %s245_s27 }
  0x24   : > { %2091 = dma.hbm_to_vmem [thread:$0]  (!%p2089_p10), %s246_s27, 6144, %s248_s13, %s233_s17, %s2342_s1, %s2342_s1, %s2343_s3  }
  0x25   : > { %259 = sbr.rel (%p2433_p8) target bundleno = 613 (0x265), region = 40  ;;  %s2472_s25 = sand.u32 (!%p2433_p8), 1, %s2320_s19  }
  0x26   : > { %s2068_s6 = smul.u32 (!%p2433_p8), 384, %s2472_s25  ;;  %s262_s9 = scalar_lea.sflag (!%p2433_p8), [#allocation4], %s2472_s25 }
  0x28   : > { %s2476_s12 = scalar_lea.vmem (!%p2433_p8), [#allocation3], %s2068_s6 }
  0x2a   : > { %2303 = dma.done.wait (%p2420_p4), %s262_s9, 6144  }
  0x2b   : > { %2305 = vsyncadd (%p2420_p4), %s262_s9, 4294961152 }
  0x2c   : > { %2307 = dma.done.wait (%p2410_p1), [#allocation7], 4096  }
  0x2d   : > { %2309 = vsyncadd (%p2410_p1), [#allocation7], 4294963200  ;;  %v2040_v0 = vld [vmem:[#allocation6 + $0x38] sm:$0xff]  ;;  %v2039_v3 = vld [vmem:[#allocation6 + $0x30] sm:$0xff]  ;;  %s1659_s26 = sshll.u32 %s2472_s25, 8  ;;  %s2065_s11 = sshll.u32 %s2328_s21, 8 }
  0x2e   : > { %v2048_v1 = vld [vmem:[#allocation6 + $0x78] sm:$0xff]  ;;  %887 = vmatpush.bf16.msra.mxu0 %v2040_v0  ;;  %v2047_v4 = vld [vmem:[#allocation6 + $0x70] sm:$0xff]  ;;  %v2038_v6 = vld [vmem:[#allocation6 + $0x28] sm:$0xff]  ;;  %s2612_s7 = scalar_lea.vmem [#allocation9], %s1659_s26  ;;  %s1538_s15 = scalar_lea.hbm %s2735_s5, %s2065_s11 }
  0x2f   : > { %v2056_v2 = vld [vmem:[#allocation6 + $0xb8] sm:$0xff]  ;;  %976 = vmatpush.bf16.msra.mxu1 %v2048_v1  ;;  %v2055_v5 = vld [vmem:[#allocation6 + $0xb0] sm:$0xff]  ;;  %v2046_v7 = vld [vmem:[#allocation6 + $0x68] sm:$0xff]  ;;  %s1539_s16 = sshll.u32 %s2612_s7, 4  ;;  %s1541_s27 = sshll.u32 %s1538_s15, 4  ;;  %s1540_s16 = int_to_ptr.vmem [resolvable:$true] %s1539_s16  ;;  %s1542_s27 = int_to_ptr.hbm [resolvable:$true] %s1541_s27 }
  0x30   : > { %1065 = vmatpush.bf16.msra.mxu2 %v2056_v2  ;;  %v2054_v8 = vld [vmem:[#allocation6 + $0xa8] sm:$0xff]  ;;  %v2037_v9 = vld [vmem:[#allocation6 + $0x20] sm:$0xff]  ;;  %v2036_v12 = vld [vmem:[#allocation6 + $0x18] sm:$0xff]  ;;  %s1527_s17 = scalar_lea.sflag [#allocation5], %s2472_s25  ;;  %s2264_s6 = sshra.s32 %s1542_s27, 4  ;;  %s2265_s6 = int_to_ptr.hbm [resolvable:$true] %s2264_s6 }
  0x31   : > { %v2045_v10 = vld [vmem:[#allocation6 + $0x60] sm:$0xff]  ;;  %v2044_v13 = vld [vmem:[#allocation6 + $0x58] sm:$0xff]  ;;  %v2035_v15 = vld [vmem:[#allocation6 + $0x10] sm:$0xff]  ;;  %s2266_s21 = scalar_lea.hbm %s2265_s6, 256  ;;  %s2270_s1 = scalar_lea.hbm %s2735_s5, 512 }
  0x32   : > { %888 = vmatpush.bf16.msra.mxu0 %v2039_v3  ;;  %v2053_v11 = vld [vmem:[#allocation6 + $0xa0] sm:$0xff]  ;;  %v2052_v14 = vld [vmem:[#allocation6 + $0x98] sm:$0xff]  ;;  %v2043_v16 = vld [vmem:[#allocation6 + $0x50] sm:$0xff]  ;;  %p2267_p1 = scmp.ne.s32.totalorder %s2265_s6, %s2266_s21  ;;  %p2271_p8 = scmp.lt.s32.totalorder %s2265_s6, %s2735_s5 }
  0x33   : > { %977 = vmatpush.bf16.msra.mxu1 %v2047_v4  ;;  %v2051_v17 = vld [vmem:[#allocation6 + $0x90] sm:$0xff]  ;;  %v2034_v18 = vld [vmem:[#allocation6 + $0x8] sm:$0xff]  ;;  %v2033_v21 = vld [vmem:[#allocation6] sm:$0xff]  ;;  %p2272_p12 = scmp.lt.s32.totalorder %s2270_s1, %s2266_s21 }
  0x34   : > { %1066 = vmatpush.bf16.msra.mxu2 %v2055_v5  ;;  %v2042_v19 = vld [vmem:[#allocation6 + $0x48] sm:$0xff]  ;;  %v2041_v22 = vld [vmem:[#allocation6 + $0x40] sm:$0xff]  ;;  %v1664_v26 = vld [vmem:[%s2476_s12 + $0xc] sm:$0xf0]  ;;  %p2268_p2 = pnand %p2267_p1, %p2455_p7 }
  0x35   : > { %v2050_v20 = vld [vmem:[#allocation6 + $0x88] sm:$0xff]  ;;  %v1662_v23 = vld [vmem:[%s2476_s12] sm:$0xf]  ;;  %v1985_v25 = vld [vmem:[%s2476_s12 + $0x4] sm:$0xf]  ;;  %p2273_p13 = por %p2272_p12, %p2271_p8 }
  0x36   : > { %889 = vmatpush.bf16.msra.mxu0 %v2038_v6  ;;  %v1986_v24 = vld [vmem:[%s2476_s12 + $0x8] sm:$0xf0]  ;;  %v2049_v27 = vld [vmem:[#allocation6 + $0x80] sm:$0xff]  ;;  %v1670_v28 = vld [vmem:[%s2476_s12 + $0x8] sm:$0xf]  ;;  %v1667_v31 = vor.u32 %v1985_v25, %v1664_v26  ;;  %p2269_p4 = pneg %p2268_p2 }
  0x37   : > { %978 = vmatpush.bf16.msra.mxu1 %v2046_v7  ;;  %v1987_v29 = vld [vmem:[%s2476_s12 + $0x10] sm:$0xf0]  ;;  %v1663_v30 = vor.u32 %v1986_v24, %v1662_v23  ;;  %v1674_v33 = vld [vmem:[%s2476_s12 + $0x18] sm:$0xf]  ;;  %v1989_v34 = vld [vmem:[%s2476_s12 + $0x20] sm:$0xf0] }
  0x38   : > { %1067 = vmatpush.bf16.msra.mxu2 %v2054_v8  ;;  %v1671_v32 = vor.u32 %v1987_v29, %v1670_v28  ;;  %v1988_v35 = vld [vmem:[%s2476_s12 + $0x1c] sm:$0xf]  ;;  %v1676_v36 = vld [vmem:[%s2476_s12 + $0x24] sm:$0xf0]  ;;  %v1682_v37 = vld [vmem:[%s2476_s12 + $0x20] sm:$0xf]  ;;  %v1675_v39 = vor.u32 %v1989_v34, %v1674_v33  ;;  %p2274_p0 = pnand %p2273_p13, %p2269_p4 }
  0x39   : > { %v1990_v38 = vld [vmem:[%s2476_s12 + $0x28] sm:$0xf0]  ;;  %v1679_v40 = vor.u32 %v1988_v35, %v1676_v36  ;;  %v1686_v42 = vld [vmem:[%s2476_s12 + $0x30] sm:$0xf]  ;;  %v1992_v43 = vld [vmem:[%s2476_s12 + $0x38] sm:$0xf0] }
  0x3a   : > { %890 = vmatpush.bf16.msra.mxu0 %v2037_v9  ;;  %v1683_v41 = vor.u32 %v1990_v38, %v1682_v37  ;;  %v1991_v44 = vld [vmem:[%s2476_s12 + $0x34] sm:$0xf]  ;;  %v1688_v45 = vld [vmem:[%s2476_s12 + $0x3c] sm:$0xf0]  ;;  %v1694_v46 = vld [vmem:[%s2476_s12 + $0x38] sm:$0xf]  ;;  %v1687_v48 = vor.u32 %v1992_v43, %v1686_v42 }
  0x3b   : > { %979 = vmatpush.bf16.msra.mxu1 %v2045_v10  ;;  %v1993_v47 = vld [vmem:[%s2476_s12 + $0x40] sm:$0xf0]  ;;  %v1691_v49 = vor.u32 %v1991_v44, %v1688_v45  ;;  %v1698_v51 = vld [vmem:[%s2476_s12 + $0x48] sm:$0xf]  ;;  %v1995_v52 = vld [vmem:[%s2476_s12 + $0x50] sm:$0xf0] }
  0x3c   : > { %1068 = vmatpush.bf16.msra.mxu2 %v2053_v11  ;;  %v1695_v50 = vor.u32 %v1993_v47, %v1694_v46  ;;  %v1994_v53 = vld [vmem:[%s2476_s12 + $0x4c] sm:$0xf]  ;;  %v1700_v54 = vld [vmem:[%s2476_s12 + $0x54] sm:$0xf0]  ;;  %v1706_v55 = vld [vmem:[%s2476_s12 + $0x50] sm:$0xf]  ;;  %v1699_v57 = vor.u32 %v1995_v52, %v1698_v51 }
  0x3d   : > { %v1996_v56 = vld [vmem:[%s2476_s12 + $0x58] sm:$0xf0]  ;;  %v1703_v58 = vor.u32 %v1994_v53, %v1700_v54  ;;  %v1710_v60 = vld [vmem:[%s2476_s12 + $0x60] sm:$0xf]  ;;  %v1998_v61 = vld [vmem:[%s2476_s12 + $0x68] sm:$0xf0] }
  0x3e   : > { %891 = vmatpush.bf16.msra.mxu0 %v2036_v12  ;;  %v1707_v59 = vor.u32 %v1996_v56, %v1706_v55  ;;  %v1997_v62 = vld [vmem:[%s2476_s12 + $0x64] sm:$0xf]  ;;  %v1712_v63 = vld [vmem:[%s2476_s12 + $0x6c] sm:$0xf0]  ;;  %v1718_v0 = vld [vmem:[%s2476_s12 + $0x68] sm:$0xf]  ;;  %v1711_v2 = vor.u32 %v1998_v61, %v1710_v60 }
  0x3f   : > { %980 = vmatpush.bf16.msra.mxu1 %v2044_v13  ;;  %v1999_v1 = vld [vmem:[%s2476_s12 + $0x70] sm:$0xf0]  ;;  %v1715_v3 = vor.u32 %v1997_v62, %v1712_v63  ;;  %v1722_v5 = vld [vmem:[%s2476_s12 + $0x78] sm:$0xf]  ;;  %v2001_v6 = vld [vmem:[%s2476_s12 + $0x80] sm:$0xf0] }
  0x40   : > { %1069 = vmatpush.bf16.msra.mxu2 %v2052_v14  ;;  %v1719_v4 = vor.u32 %v1999_v1, %v1718_v0  ;;  %v2000_v7 = vld [vmem:[%s2476_s12 + $0x7c] sm:$0xf]  ;;  %v1724_v8 = vld [vmem:[%s2476_s12 + $0x84] sm:$0xf0]  ;;  %v1730_v9 = vld [vmem:[%s2476_s12 + $0x80] sm:$0xf]  ;;  %v1723_v11 = vor.u32 %v2001_v6, %v1722_v5 }
  0x41   : > { %v2002_v10 = vld [vmem:[%s2476_s12 + $0x88] sm:$0xf0]  ;;  %v1727_v12 = vor.u32 %v2000_v7, %v1724_v8  ;;  %v2064_v14 = vld [vmem:[#allocation8 + $0x38] sm:$0xff]  ;;  %v2061_v26 = vld [vmem:[#allocation8 + $0x20] sm:$0xff] }
  0x42   : > { %892 = vmatpush.bf16.msra.mxu0 %v2035_v15  ;;  %v1731_v13 = vor.u32 %v2002_v10, %v1730_v9  ;;  %1405 = vmatpush.bf16.msra.mxu3 %v2064_v14  ;;  %v2063_v15 = vld [vmem:[#allocation8 + $0x30] sm:$0xff]  ;;  %v2062_v24 = vld [vmem:[#allocation8 + $0x28] sm:$0xff]  ;;  %v2008_v34 = vld [vmem:[%s2476_s12 + $0xb8] sm:$0xf0] }
  0x43   : > { %981 = vmatpush.bf16.msra.mxu1 %v2043_v16  ;;  %v1734_v16 = vld [vmem:[%s2476_s12 + $0x90] sm:$0xf]  ;;  %v1746_v28 = vld [vmem:[%s2476_s12 + $0xa8] sm:$0xf]  ;;  %v2009_v42 = vld [vmem:[%s2476_s12 + $0xc4] sm:$0xf] }
  0x44   : > { %1070 = vmatpush.bf16.msra.mxu2 %v2051_v17  ;;  %v2004_v17 = vld [vmem:[%s2476_s12 + $0x98] sm:$0xf0]  ;;  %v2059_v29 = vld [vmem:[#allocation8 + $0x10] sm:$0xff]  ;;  %v2058_v37 = vld [vmem:[#allocation8 + $0x8] sm:$0xff] }
  0x45   : > { %v1754_v33 = vld [vmem:[%s2476_s12 + $0xb0] sm:$0xf]  ;;  %v1766_v44 = vld [vmem:[%s2476_s12 + $0xc8] sm:$0xf]  ;;  %v2011_v45 = vld [vmem:[%s2476_s12 + $0xd0] sm:$0xf0] }
  0x46   : > { %893 = vmatpush.bf16.msra.mxu0 %v2034_v18  ;;  %1406 = vmatpush.bf16.msra.mxu3 %v2063_v15  ;;  %v2003_v18 = vld [vmem:[%s2476_s12 + $0x94] sm:$0xf]  ;;  %v1755_v38 = vor.u32 %v2008_v34, %v1754_v33  ;;  %v1760_v43 = vld [vmem:[%s2476_s12 + $0xcc] sm:$0xf0]  ;;  %v2543_v55 = vld [vmem:[%s2732_s2] ss:$0 sm:$0xff] }
  0x47   : > { %982 = vmatpush.bf16.msra.mxu1 %v2042_v19  ;;  %v1736_v19 = vld [vmem:[%s2476_s12 + $0x9c] sm:$0xf0]  ;;  %v1763_v47 = vor.u32 %v2009_v42, %v1760_v43  ;;  %v1770_v56 = vld [vmem:[%s2476_s12 + $0xd8] sm:$0xf]  ;;  %v1772_v60 = vld [vmem:[%s2476_s12 + $0xe4] sm:$0xf0] }
  0x48   : > { %1071 = vmatpush.bf16.msra.mxu2 %v2050_v20  ;;  %v1742_v20 = vld [vmem:[%s2476_s12 + $0x98] sm:$0xf]  ;;  %v1739_v23 = vor.u32 %v2003_v18, %v1736_v19  ;;  %v1778_v61 = vld [vmem:[%s2476_s12 + $0xe0] sm:$0xf]  ;;  %v2014_v62 = vld [vmem:[%s2476_s12 + $0xe8] sm:$0xf0] }
  0x49   : > { %v1779_v7 = vor.u32 %v2014_v62, %v1778_v61  ;;  %v2016_v18 = vld [vmem:[%s2476_s12 + $0xf8] sm:$0xf0]  ;;  %v2015_v19 = vld [vmem:[%s2476_s12 + $0xf4] sm:$0xf]  ;;  %v2018_v43 = vld [vmem:[%s2476_s12 + $0x10c] sm:$0xf] }
  0x4a   : > { %894 = vmatpush.bf16.msra.mxu0 %v2033_v21  ;;  %v2005_v21 = vld [vmem:[%s2476_s12 + $0xa0] sm:$0xf0]  ;;  %1407 = vmatpush.bf16.msra.mxu3 %v2062_v24  ;;  %v2019_v42 = vld [vmem:[%s2476_s12 + $0x110] sm:$0xf0] }
  0x4b   : > { %983 = vmatpush.bf16.msra.mxu1 %v2041_v22  ;;  %v1735_v22 = vor.u32 %v2004_v17, %v1734_v16  ;;  %v1743_v25 = vor.u32 %v2005_v21, %v1742_v20  ;;  %v1782_v16 = vld [vmem:[%s2476_s12 + $0xf0] sm:$0xf]  ;;  %v1784_v20 = vld [vmem:[%s2476_s12 + $0xfc] sm:$0xf0]  ;;  %v1790_v21 = vld [vmem:[%s2476_s12 + $0xf8] sm:$0xf] }
  0x4c   : > { %1072 = vmatpush.bf16.msra.mxu2 %v2049_v27  ;;  %v2060_v27 = vld [vmem:[#allocation8 + $0x18] sm:$0xff] }
  0x4d   : > { %895 = vmatmul.bf16.vlgmr.msra.gmra.mxu0 %v1663_v30  ;;  %v2007_v30 = vld [vmem:[%s2476_s12 + $0xb0] sm:$0xf0] }
  0x4e   : > { %984 = vmatmul.bf16.vlgmr.msra.gmra.mxu1 %v1667_v31  ;;  %1408 = vmatpush.bf16.msra.mxu3 %v2061_v26  ;;  %v2006_v31 = vld [vmem:[%s2476_s12 + $0xac] sm:$0xf]  ;;  %v1747_v35 = vor.u32 %v2007_v30, %v1746_v28  ;;  %v1787_v26 = vor.u32 %v2015_v19, %v1784_v20 }
  0x4f   : > { %1073 = vmatmul.bf16.vlgmr.msra.gmra.mxu2 %v1671_v32  ;;  %v1748_v32 = vld [vmem:[%s2476_s12 + $0xb4] sm:$0xf0] }
  0x50   : > { %v1751_v36 = vor.u32 %v2006_v31, %v1748_v32 }
  0x52   : > { %1409 = vmatpush.bf16.msra.mxu3 %v2060_v27 }
  0x56   : > { %1410 = vmatpush.bf16.msra.mxu3 %v2059_v29 }
  0x5a   : > { %1411 = vmatpush.bf16.msra.mxu3 %v2058_v37 }
  0x5d   : > { %900 = vmatmul.bf16.gmra.mxu0 %v1675_v39  ;;  %v2057_v39 = vld [vmem:[#allocation8] sm:$0xff] }
  0x5e   : > { %989 = vmatmul.bf16.gmra.mxu1 %v1679_v40  ;;  %1412 = vmatpush.bf16.msra.mxu3 %v2057_v39  ;;  %v1758_v40 = vld [vmem:[%s2476_s12 + $0xc0] sm:$0xf] }
  0x5f   : > { %1078 = vmatmul.bf16.gmra.mxu2 %v1683_v41  ;;  %v2010_v41 = vld [vmem:[%s2476_s12 + $0xc8] sm:$0xf0] }
  0x60   : > { %v1759_v46 = vor.u32 %v2010_v41, %v1758_v40  ;;  %v1794_v40 = vld [vmem:[%s2476_s12 + $0x108] sm:$0xf] }
  0x6d   : > { %905 = vmatmul.bf16.gmra.mxu0 %v1687_v48 }
  0x6e   : > { %994 = vmatmul.bf16.gmra.mxu1 %v1691_v49 }
  0x6f   : > { %1083 = vmatmul.bf16.gmra.mxu2 %v1695_v50  ;;  %v1767_v50 = vor.u32 %v2011_v45, %v1766_v44  ;;  %v1796_v44 = vld [vmem:[%s2476_s12 + $0x114] sm:$0xf0]  ;;  %v1802_v45 = vld [vmem:[%s2476_s12 + $0x110] sm:$0xf] }
  0x7d   : > { %910 = vmatmul.bf16.gmra.mxu0 %v1699_v57 }
  0x7e   : > { %999 = vmatmul.bf16.gmra.mxu1 %v1703_v58  ;;  %v2013_v58 = vld [vmem:[%s2476_s12 + $0xe0] sm:$0xf0] }
  0x7f   : > { %1088 = vmatmul.bf16.gmra.mxu2 %v1707_v59  ;;  %v2012_v59 = vld [vmem:[%s2476_s12 + $0xdc] sm:$0xf]  ;;  %v1771_v1 = vor.u32 %v2013_v58, %v1770_v56 }
  0x8d   : > { %915 = vmatmul.bf16.gmra.mxu0 %v1711_v2  ;;  %v1775_v2 = vor.u32 %v2012_v59, %v1772_v60 }
  0x8e   : > { %1004 = vmatmul.bf16.gmra.mxu1 %v1715_v3 }
  0x8f   : > { %1093 = vmatmul.bf16.gmra.mxu2 %v1719_v4 }
  0x9d   : > { %920 = vmatmul.bf16.gmra.mxu0 %v1723_v11 }
  0x9e   : > { %1009 = vmatmul.bf16.gmra.mxu1 %v1727_v12 }
  0x9f   : > { %1098 = vmatmul.bf16.gmra.mxu2 %v1731_v13 }
  0xad   : > { %925 = vmatmul.bf16.gmra.mxu0 %v1735_v22  ;;  %v2017_v22 = vld [vmem:[%s2476_s12 + $0x100] sm:$0xf0] }
  0xae   : > { %1014 = vmatmul.bf16.gmra.mxu1 %v1739_v23  ;;  %v1791_v31 = vor.u32 %v2017_v22, %v1790_v21 }
  0xaf   : > { %1103 = vmatmul.bf16.gmra.mxu2 %v1743_v25  ;;  %v1783_v25 = vor.u32 %v2016_v18, %v1782_v16 }
  0xbd   : > { %930 = vmatmul.bf16.gmra.mxu0 %v1747_v35 }
  0xbe   : > { %1019 = vmatmul.bf16.gmra.mxu1 %v1751_v36 }
  0xbf   : > { %1108 = vmatmul.bf16.gmra.mxu2 %v1755_v38 }
  0xca   : > { %v896_v48 = vpop.f32.mrf.mxu0 }
  0xcb   : > { %v985_v49 = vpop.f32.mrf.mxu1 }
  0xcc   : > { %v986_v52 = vadd.f32 %v985_v49, %v896_v48  ;;  %v1795_v49 = vor.u32 %v2019_v42, %v1794_v40 }
  0xcd   : > { %935 = vmatmul.bf16.gmra.mxu0 %v1759_v46  ;;  %v2020_v46 = vld [vmem:[%s2476_s12 + $0x118] sm:$0xf0] }
  0xce   : > { %1024 = vmatmul.bf16.gmra.mxu1 %v1763_v47  ;;  %v1803_v56 = vor.u32 %v2020_v46, %v1802_v45 }
  0xcf   : > { %1113 = vmatmul.bf16.gmra.mxu2 %v1767_v50  ;;  %v1799_v50 = vor.u32 %v2018_v43, %v1796_v44 }
  0xd2   : > { %v1074_v51 = vpop.f32.mrf.mxu2  ;;  %v898_v53 = vpop.f32.mrf.mxu0 }
  0xd3   : > { %v987_v54 = vpop.f32.mrf.mxu1  ;;  %v1075_v57 = vadd.f32 %v1074_v51, %v986_v52 }
  0xd4   : > { %v988_v63 = vadd.f32 %v987_v54, %v898_v53 }
  0xd5   : > { %v1257_v3 = vadd.f32 %v2543_v55, %v1075_v57 }
  0xd7   : > { %v1289_v9 = vmax.f32 %v1257_v3, 0.0  ;;  %v2022_v3 = vld [vmem:[%s2476_s12 + $0x128] sm:$0xf0] }
  0xda   : > { %v1076_v0 = vpop.f32.mrf.mxu2  ;;  %v901_v5 = vpop.f32.mrf.mxu0 }
  0xdb   : > { %v1077_v4 = vadd.f32 %v1076_v0, %v988_v63  ;;  %v990_v6 = vpop.f32.mrf.mxu1 }
  0xdc   : > { %v991_v13 = vadd.f32 %v990_v6, %v901_v5  ;;  %v1808_v5 = vld [vmem:[%s2476_s12 + $0x12c] sm:$0xf0]  ;;  %v1814_v6 = vld [vmem:[%s2476_s12 + $0x128] sm:$0xf] }
  0xdd   : > { %v1258_v8 = vadd.f32 %v2543_v55, %v1077_v4  ;;  %940 = vmatmul.bf16.gmra.mxu0 %v1771_v1  ;;  %v1806_v1 = vld [vmem:[%s2476_s12 + $0x120] sm:$0xf]  ;;  %v2021_v4 = vld [vmem:[%s2476_s12 + $0x124] sm:$0xf] }
  0xde   : > { %1029 = vmatmul.bf16.gmra.mxu1 %v1775_v2 }
  0xdf   : > { %1118 = vmatmul.bf16.gmra.mxu2 %v1779_v7  ;;  %v1290_v10 = vmax.f32 %v1258_v8, 0.0  ;;  %v2023_v7 = vld [vmem:[%s2476_s12 + $0x130] sm:$0xf0] }
  0xe0   : > { %v1815_v16 = vor.u32 %v2023_v7, %v1814_v6 }
  0xe1   : > { %v1321_v11 = vpack.c.bf16 %v1290_v10, %v1289_v9  ;;  %v1807_v10 = vor.u32 %v2022_v3, %v1806_v1 }
  0xe2   : > { %v1079_v12 = vpop.f32.mrf.mxu2  ;;  %v903_v14 = vpop.f32.mrf.mxu0 }
  0xe3   : > { %1413 = vmatmul.bf16.vlgmr.msra.gmra.mxu3 %v1321_v11  ;;  %v992_v15 = vpop.f32.mrf.mxu1  ;;  %v1080_v17 = vadd.f32 %v1079_v12, %v991_v13  ;;  %v1811_v11 = vor.u32 %v2021_v4, %v1808_v5 }
  0xe4   : > { %v993_v23 = vadd.f32 %v992_v15, %v903_v14 }
  0xe5   : > { %v1259_v27 = vadd.f32 %v2543_v55, %v1080_v17 }
  0xe7   : > { %v1291_v33 = vmax.f32 %v1259_v27, 0.0  ;;  %v2025_v27 = vld [vmem:[%s2476_s12 + $0x140] sm:$0xf0] }
  0xea   : > { %v1081_v24 = vpop.f32.mrf.mxu2  ;;  %v906_v29 = vpop.f32.mrf.mxu0 }
  0xeb   : > { %v1082_v28 = vadd.f32 %v1081_v24, %v993_v23  ;;  %v995_v30 = vpop.f32.mrf.mxu1 }
  0xec   : > { %v996_v37 = vadd.f32 %v995_v30, %v906_v29  ;;  %v1820_v29 = vld [vmem:[%s2476_s12 + $0x144] sm:$0xf0]  ;;  %v1826_v30 = vld [vmem:[%s2476_s12 + $0x140] sm:$0xf] }
  0xed   : > { %v1260_v32 = vadd.f32 %v2543_v55, %v1082_v28  ;;  %945 = vmatmul.bf16.gmra.mxu0 %v1783_v25  ;;  %v1818_v25 = vld [vmem:[%s2476_s12 + $0x138] sm:$0xf]  ;;  %v2024_v28 = vld [vmem:[%s2476_s12 + $0x13c] sm:$0xf] }
  0xee   : > { %1034 = vmatmul.bf16.gmra.mxu1 %v1787_v26 }
  0xef   : > { %1123 = vmatmul.bf16.gmra.mxu2 %v1791_v31  ;;  %v1292_v34 = vmax.f32 %v1260_v32, 0.0  ;;  %v2026_v31 = vld [vmem:[%s2476_s12 + $0x148] sm:$0xf0] }
  0xf0   : > { %v1827_v40 = vor.u32 %v2026_v31, %v1826_v30 }
  0xf1   : > { %v1322_v35 = vpack.c.bf16 %v1292_v34, %v1291_v33  ;;  %v1819_v34 = vor.u32 %v2025_v27, %v1818_v25 }
  0xf2   : > { %v1084_v36 = vpop.f32.mrf.mxu2  ;;  %v908_v38 = vpop.f32.mrf.mxu0 }
  0xf3   : > { %1418 = vmatmul.bf16.gmra.mxu3 %v1322_v35  ;;  %v997_v39 = vpop.f32.mrf.mxu1  ;;  %v1085_v41 = vadd.f32 %v1084_v36, %v996_v37  ;;  %v1823_v35 = vor.u32 %v2024_v28, %v1820_v29 }
  0xf4   : > { %v998_v47 = vadd.f32 %v997_v39, %v908_v38 }
  0xf5   : > { %v1261_v51 = vadd.f32 %v2543_v55, %v1085_v41 }
  0xf7   : > { %v1293_v58 = vmax.f32 %v1261_v51, 0.0  ;;  %v2028_v51 = vld [vmem:[%s2476_s12 + $0x158] sm:$0xf0] }
  0xfa   : > { %v1086_v48 = vpop.f32.mrf.mxu2  ;;  %v911_v53 = vpop.f32.mrf.mxu0 }
  0xfb   : > { %v1087_v52 = vadd.f32 %v1086_v48, %v998_v47  ;;  %v1000_v54 = vpop.f32.mrf.mxu1 }
  0xfc   : > { %v1001_v62 = vadd.f32 %v1000_v54, %v911_v53  ;;  %v1832_v53 = vld [vmem:[%s2476_s12 + $0x15c] sm:$0xf0]  ;;  %v1838_v54 = vld [vmem:[%s2476_s12 + $0x158] sm:$0xf] }
  0xfd   : > { %v1262_v57 = vadd.f32 %v2543_v55, %v1087_v52  ;;  %950 = vmatmul.bf16.gmra.mxu0 %v1795_v49  ;;  %v1830_v49 = vld [vmem:[%s2476_s12 + $0x150] sm:$0xf]  ;;  %v2027_v52 = vld [vmem:[%s2476_s12 + $0x154] sm:$0xf] }
  0xfe   : > { %1039 = vmatmul.bf16.gmra.mxu1 %v1799_v50 }
  0xff   : > { %1128 = vmatmul.bf16.gmra.mxu2 %v1803_v56  ;;  %v1294_v59 = vmax.f32 %v1262_v57, 0.0  ;;  %v2029_v56 = vld [vmem:[%s2476_s12 + $0x160] sm:$0xf0] }
 0x100   : > { %v1839_v1 = vor.u32 %v2029_v56, %v1838_v54 }
 0x101   : > { %v1323_v60 = vpack.c.bf16 %v1294_v59, %v1293_v58  ;;  %v1831_v59 = vor.u32 %v2028_v51, %v1830_v49 }
 0x102   : > { %v1089_v61 = vpop.f32.mrf.mxu2  ;;  %v913_v63 = vpop.f32.mrf.mxu0 }
 0x103   : > { %1423 = vmatmul.bf16.gmra.mxu3 %v1323_v60  ;;  %v1002_v0 = vpop.f32.mrf.mxu1  ;;  %v1090_v2 = vadd.f32 %v1089_v61, %v1001_v62  ;;  %v1835_v60 = vor.u32 %v2027_v52, %v1832_v53 }
 0x104   : > { %v1003_v8 = vadd.f32 %v1002_v0, %v913_v63 }
 0x105   : > { %v1263_v12 = vadd.f32 %v2543_v55, %v1090_v2 }
 0x107   : > { %v1295_v18 = vmax.f32 %v1263_v12, 0.0  ;;  %v2031_v12 = vld [vmem:[%s2476_s12 + $0x170] sm:$0xf0] }
 0x10a   : > { %v1091_v9 = vpop.f32.mrf.mxu2  ;;  %v916_v14 = vpop.f32.mrf.mxu0 }
 0x10b   : > { %v1092_v13 = vadd.f32 %v1091_v9, %v1003_v8  ;;  %v1005_v15 = vpop.f32.mrf.mxu1 }
 0x10c   : > { %v1006_v22 = vadd.f32 %v1005_v15, %v916_v14  ;;  %v1844_v14 = vld [vmem:[%s2476_s12 + $0x174] sm:$0xf0]  ;;  %v1850_v15 = vld [vmem:[%s2476_s12 + $0x170] sm:$0xf] }
 0x10d   : > { %v1264_v17 = vadd.f32 %v2543_v55, %v1092_v13  ;;  %955 = vmatmul.bf16.gmra.mxu0 %v1807_v10  ;;  %v1842_v10 = vld [vmem:[%s2476_s12 + $0x168] sm:$0xf]  ;;  %v2030_v13 = vld [vmem:[%s2476_s12 + $0x16c] sm:$0xf] }
 0x10e   : > { %1044 = vmatmul.bf16.gmra.mxu1 %v1811_v11 }
 0x10f   : > { %1133 = vmatmul.bf16.gmra.mxu2 %v1815_v16  ;;  %v1296_v19 = vmax.f32 %v1264_v17, 0.0  ;;  %v2032_v16 = vld [vmem:[%s2476_s12 + $0x178] sm:$0xf0] }
 0x110   : > { %v1851_v25 = vor.u32 %v2032_v16, %v1850_v15 }
 0x111   : > { %v1324_v20 = vpack.c.bf16 %v1296_v19, %v1295_v18  ;;  %v1843_v19 = vor.u32 %v2031_v12, %v1842_v10 }
 0x112   : > { %v1094_v21 = vpop.f32.mrf.mxu2  ;;  %v918_v23 = vpop.f32.mrf.mxu0 }
 0x113   : > { %1428 = vmatmul.bf16.gmra.mxu3 %v1324_v20  ;;  %v1007_v24 = vpop.f32.mrf.mxu1  ;;  %v1095_v26 = vadd.f32 %v1094_v21, %v1006_v22  ;;  %v1847_v20 = vor.u32 %v2030_v13, %v1844_v14 }
 0x114   : > { %v1008_v32 = vadd.f32 %v1007_v24, %v918_v23 }
 0x115   : > { %v1265_v36 = vadd.f32 %v2543_v55, %v1095_v26 }
 0x117   : > { %v1297_v42 = vmax.f32 %v1265_v36, 0.0 }
 0x11a   : > { %v1096_v33 = vpop.f32.mrf.mxu2  ;;  %v921_v38 = vpop.f32.mrf.mxu0 }
 0x11b   : > { %v1097_v37 = vadd.f32 %v1096_v33, %v1008_v32  ;;  %v1010_v39 = vpop.f32.mrf.mxu1 }
 0x11c   : > { %v1011_v46 = vadd.f32 %v1010_v39, %v921_v38 }
 0x11d   : > { %v1266_v41 = vadd.f32 %v2543_v55, %v1097_v37  ;;  %960 = vmatmul.bf16.gmra.mxu0 %v1819_v34 }
 0x11e   : > { %1049 = vmatmul.bf16.gmra.mxu1 %v1823_v35 }
 0x11f   : > { %v1298_v43 = vmax.f32 %v1266_v41, 0.0  ;;  %1138 = vmatmul.bf16.gmra.mxu2 %v1827_v40 }
 0x121   : > { %v1325_v44 = vpack.c.bf16 %v1298_v43, %v1297_v42 }
 0x122   : > { %v1099_v45 = vpop.f32.mrf.mxu2  ;;  %v923_v47 = vpop.f32.mrf.mxu0 }
 0x123   : > { %1433 = vmatmul.bf16.gmra.mxu3 %v1325_v44  ;;  %v1012_v48 = vpop.f32.mrf.mxu1  ;;  %v1100_v50 = vadd.f32 %v1099_v45, %v1011_v46 }
 0x124   : > { %v1013_v57 = vadd.f32 %v1012_v48, %v923_v47 }
 0x125   : > { %v1267_v61 = vadd.f32 %v2543_v55, %v1100_v50 }
 0x127   : > { %v1299_v3 = vmax.f32 %v1267_v61, 0.0 }
 0x12a   : > { %v1101_v58 = vpop.f32.mrf.mxu2  ;;  %v926_v63 = vpop.f32.mrf.mxu0 }
 0x12b   : > { %v1102_v62 = vadd.f32 %v1101_v58, %v1013_v57  ;;  %v1015_v0 = vpop.f32.mrf.mxu1 }
 0x12c   : > { %v1016_v7 = vadd.f32 %v1015_v0, %v926_v63 }
 0x12d   : > { %v1268_v2 = vadd.f32 %v2543_v55, %v1102_v62  ;;  %965 = vmatmul.bf16.gmra.mxu0 %v1831_v59 }
 0x12e   : > { %1054 = vmatmul.bf16.gmra.mxu1 %v1835_v60 }
 0x12f   : > { %v1300_v4 = vmax.f32 %v1268_v2, 0.0  ;;  %1143 = vmatmul.bf16.gmra.mxu2 %v1839_v1  ;;  %v2609_v1 = vld [vmem:[%s2734_s4] ss:$0 sm:$0xff] }
 0x131   : > { %v1326_v5 = vpack.c.bf16 %v1300_v4, %v1299_v3 }
 0x132   : > { %v1104_v6 = vpop.f32.mrf.mxu2  ;;  %v928_v8 = vpop.f32.mrf.mxu0 }
 0x133   : > { %1438 = vmatmul.bf16.gmra.mxu3 %v1326_v5  ;;  %v1017_v9 = vpop.f32.mrf.mxu1  ;;  %v1105_v11 = vadd.f32 %v1104_v6, %v1016_v7 }
 0x134   : > { %v1018_v17 = vadd.f32 %v1017_v9, %v928_v8 }
 0x135   : > { %v1269_v21 = vadd.f32 %v2543_v55, %v1105_v11 }
 0x137   : > { %v1301_v27 = vmax.f32 %v1269_v21, 0.0 }
 0x13a   : > { %v1106_v18 = vpop.f32.mrf.mxu2  ;;  %v931_v23 = vpop.f32.mrf.mxu0 }
 0x13b   : > { %v1107_v22 = vadd.f32 %v1106_v18, %v1018_v17  ;;  %v1020_v24 = vpop.f32.mrf.mxu1 }
 0x13c   : > { %v1021_v31 = vadd.f32 %v1020_v24, %v931_v23 }
 0x13d   : > { %v1270_v26 = vadd.f32 %v2543_v55, %v1107_v22  ;;  %970 = vmatmul.bf16.gmra.mxu0 %v1843_v19 }
 0x13e   : > { %1059 = vmatmul.bf16.gmra.mxu1 %v1847_v20 }
 0x13f   : > { %v1302_v28 = vmax.f32 %v1270_v26, 0.0  ;;  %1148 = vmatmul.bf16.gmra.mxu2 %v1851_v25 }
 0x141   : > { %v1327_v29 = vpack.c.bf16 %v1302_v28, %v1301_v27 }
 0x142   : > { %v1109_v30 = vpop.f32.mrf.mxu2  ;;  %v933_v32 = vpop.f32.mrf.mxu0 }
 0x143   : > { %1443 = vmatmul.bf16.gmra.mxu3 %v1327_v29  ;;  %v1022_v33 = vpop.f32.mrf.mxu1  ;;  %v1110_v34 = vadd.f32 %v1109_v30, %v1021_v31 }
 0x144   : > { %v1023_v35 = vadd.f32 %v1022_v33, %v933_v32 }
 0x145   : > { %v1271_v37 = vadd.f32 %v2543_v55, %v1110_v34 }
 0x147   : > { %v1303_v42 = vmax.f32 %v1271_v37, 0.0 }
 0x14a   : > { %v1111_v36 = vpop.f32.mrf.mxu2  ;;  %v936_v39 = vpop.f32.mrf.mxu0 }
 0x14b   : > { %v1112_v38 = vadd.f32 %v1111_v36, %v1023_v35  ;;  %v1025_v40 = vpop.f32.mrf.mxu1 }
 0x14c   : > { %v1026_v46 = vadd.f32 %v1025_v40, %v936_v39 }
 0x14d   : > { %v1272_v41 = vadd.f32 %v2543_v55, %v1112_v38 }
 0x14f   : > { %v1304_v43 = vmax.f32 %v1272_v41, 0.0 }
 0x151   : > { %v1328_v44 = vpack.c.bf16 %v1304_v43, %v1303_v42 }
 0x152   : > { %v1114_v45 = vpop.f32.mrf.mxu2  ;;  %v938_v47 = vpop.f32.mrf.mxu0 }
 0x153   : > { %1448 = vmatmul.bf16.gmra.mxu3 %v1328_v44  ;;  %v1027_v48 = vpop.f32.mrf.mxu1  ;;  %v1115_v49 = vadd.f32 %v1114_v45, %v1026_v46 }
 0x154   : > { %v1028_v50 = vadd.f32 %v1027_v48, %v938_v47 }
 0x155   : > { %v1273_v52 = vadd.f32 %v2543_v55, %v1115_v49 }
 0x157   : > { %v1305_v58 = vmax.f32 %v1273_v52, 0.0 }
 0x15a   : > { %v1116_v51 = vpop.f32.mrf.mxu2  ;;  %v941_v54 = vpop.f32.mrf.mxu0 }
 0x15b   : > { %v1117_v53 = vadd.f32 %v1116_v51, %v1028_v50  ;;  %v1030_v56 = vpop.f32.mrf.mxu1 }
 0x15c   : > { %v1031_v62 = vadd.f32 %v1030_v56, %v941_v54 }
 0x15d   : > { %v1274_v57 = vadd.f32 %v2543_v55, %v1117_v53 }
 0x15f   : > { %v1306_v59 = vmax.f32 %v1274_v57, 0.0 }
 0x161   : > { %v1329_v60 = vpack.c.bf16 %v1306_v59, %v1305_v58 }
 0x162   : > { %v1119_v61 = vpop.f32.mrf.mxu2  ;;  %v943_v63 = vpop.f32.mrf.mxu0 }
 0x163   : > { %1453 = vmatmul.bf16.gmra.mxu3 %v1329_v60  ;;  %v1032_v0 = vpop.f32.mrf.mxu1  ;;  %v1120_v3 = vadd.f32 %v1119_v61, %v1031_v62 }
 0x164   : > { %v1033_v5 = vadd.f32 %v1032_v0, %v943_v63 }
 0x165   : > { %v1275_v7 = vadd.f32 %v2543_v55, %v1120_v3 }
 0x166   : > { %v1414_v2 = vpop.f32.mrf.mxu3 }
 0x167   : > { %v1415_v4 = vadd.f32 %v2609_v1, %v1414_v2  ;;  %v1307_v13 = vmax.f32 %v1275_v7, 0.0 }
 0x169   : > { %1494 = vst [vmem:[%s2612_s7] sm:$0xff] %v1415_v4 }
 0x16a   : > { %v1121_v6 = vpop.f32.mrf.mxu2  ;;  %v946_v9 = vpop.f32.mrf.mxu0 }
 0x16b   : > { %v1122_v8 = vadd.f32 %v1121_v6, %v1033_v5  ;;  %v1035_v10 = vpop.f32.mrf.mxu1 }
 0x16c   : > { %v1036_v18 = vadd.f32 %v1035_v10, %v946_v9 }
 0x16d   : > { %v1276_v11 = vadd.f32 %v2543_v55, %v1122_v8 }
 0x16e   : > { %v1416_v12 = vpop.f32.mrf.mxu3 }
 0x16f   : > { %v1308_v14 = vmax.f32 %v1276_v11, 0.0  ;;  %v1417_v15 = vadd.f32 %v2609_v1, %v1416_v12 }
 0x171   : > { %1495 = vst [vmem:[%s2612_s7 + $0x8] sm:$0xff] %v1417_v15  ;;  %v1330_v16 = vpack.c.bf16 %v1308_v14, %v1307_v13 }
 0x172   : > { %v1124_v17 = vpop.f32.mrf.mxu2  ;;  %v948_v19 = vpop.f32.mrf.mxu0 }
 0x173   : > { %1458 = vmatmul.bf16.gmra.mxu3 %v1330_v16  ;;  %v1037_v20 = vpop.f32.mrf.mxu1  ;;  %v1125_v22 = vadd.f32 %v1124_v17, %v1036_v18 }
 0x174   : > { %v1038_v24 = vadd.f32 %v1037_v20, %v948_v19 }
 0x175   : > { %v1277_v26 = vadd.f32 %v2543_v55, %v1125_v22 }
 0x176   : > { %v1419_v21 = vpop.f32.mrf.mxu3 }
 0x177   : > { %v1420_v23 = vadd.f32 %v2609_v1, %v1419_v21  ;;  %v1309_v32 = vmax.f32 %v1277_v26, 0.0 }
 0x179   : > { %1496 = vst [vmem:[%s2612_s7 + $0x10] sm:$0xff] %v1420_v23 }
 0x17a   : > { %v1126_v25 = vpop.f32.mrf.mxu2  ;;  %v951_v28 = vpop.f32.mrf.mxu0 }
 0x17b   : > { %v1127_v27 = vadd.f32 %v1126_v25, %v1038_v24  ;;  %v1040_v29 = vpop.f32.mrf.mxu1 }
 0x17c   : > { %v1041_v37 = vadd.f32 %v1040_v29, %v951_v28 }
 0x17d   : > { %v1278_v30 = vadd.f32 %v2543_v55, %v1127_v27 }
 0x17e   : > { %v1421_v31 = vpop.f32.mrf.mxu3 }
 0x17f   : > { %v1310_v33 = vmax.f32 %v1278_v30, 0.0  ;;  %v1422_v34 = vadd.f32 %v2609_v1, %v1421_v31 }
 0x181   : > { %1497 = vst [vmem:[%s2612_s7 + $0x18] sm:$0xff] %v1422_v34  ;;  %v1331_v35 = vpack.c.bf16 %v1310_v33, %v1309_v32 }
 0x182   : > { %v1129_v36 = vpop.f32.mrf.mxu2  ;;  %v953_v38 = vpop.f32.mrf.mxu0 }
 0x183   : > { %1463 = vmatmul.bf16.gmra.mxu3 %v1331_v35  ;;  %v1042_v39 = vpop.f32.mrf.mxu1  ;;  %v1130_v41 = vadd.f32 %v1129_v36, %v1041_v37 }
 0x184   : > { %v1043_v43 = vadd.f32 %v1042_v39, %v953_v38 }
 0x185   : > { %v1279_v45 = vadd.f32 %v2543_v55, %v1130_v41 }
 0x186   : > { %v1424_v40 = vpop.f32.mrf.mxu3 }
 0x187   : > { %v1425_v42 = vadd.f32 %v2609_v1, %v1424_v40  ;;  %v1311_v51 = vmax.f32 %v1279_v45, 0.0 }
 0x189   : > { %1498 = vst [vmem:[%s2612_s7 + $0x20] sm:$0xff] %v1425_v42 }
 0x18a   : > { %v1131_v44 = vpop.f32.mrf.mxu2  ;;  %v956_v47 = vpop.f32.mrf.mxu0 }
 0x18b   : > { %v1132_v46 = vadd.f32 %v1131_v44, %v1043_v43  ;;  %v1045_v48 = vpop.f32.mrf.mxu1 }
 0x18c   : > { %v1046_v57 = vadd.f32 %v1045_v48, %v956_v47 }
 0x18d   : > { %v1280_v49 = vadd.f32 %v2543_v55, %v1132_v46 }
 0x18e   : > { %v1426_v50 = vpop.f32.mrf.mxu3 }
 0x18f   : > { %v1312_v52 = vmax.f32 %v1280_v49, 0.0  ;;  %v1427_v53 = vadd.f32 %v2609_v1, %v1426_v50 }
 0x191   : > { %1499 = vst [vmem:[%s2612_s7 + $0x28] sm:$0xff] %v1427_v53  ;;  %v1332_v54 = vpack.c.bf16 %v1312_v52, %v1311_v51 }
 0x192   : > { %v1134_v56 = vpop.f32.mrf.mxu2  ;;  %v958_v58 = vpop.f32.mrf.mxu0 }
 0x193   : > { %1468 = vmatmul.bf16.gmra.mxu3 %v1332_v54  ;;  %v1047_v59 = vpop.f32.mrf.mxu1  ;;  %v1135_v61 = vadd.f32 %v1134_v56, %v1046_v57 }
 0x194   : > { %v1048_v63 = vadd.f32 %v1047_v59, %v958_v58 }
 0x195   : > { %v1281_v2 = vadd.f32 %v2543_v55, %v1135_v61 }
 0x196   : > { %v1429_v60 = vpop.f32.mrf.mxu3 }
 0x197   : > { %v1430_v62 = vadd.f32 %v2609_v1, %v1429_v60  ;;  %v1313_v8 = vmax.f32 %v1281_v2, 0.0 }
 0x199   : > { %1500 = vst [vmem:[%s2612_s7 + $0x30] sm:$0xff] %v1430_v62 }
 0x19a   : > { %v1136_v0 = vpop.f32.mrf.mxu2  ;;  %v961_v4 = vpop.f32.mrf.mxu0 }
 0x19b   : > { %v1137_v3 = vadd.f32 %v1136_v0, %v1048_v63  ;;  %v1050_v5 = vpop.f32.mrf.mxu1 }
 0x19c   : > { %v1051_v13 = vadd.f32 %v1050_v5, %v961_v4 }
 0x19d   : > { %v1282_v6 = vadd.f32 %v2543_v55, %v1137_v3 }
 0x19e   : > { %v1431_v7 = vpop.f32.mrf.mxu3 }
 0x19f   : > { %v1314_v9 = vmax.f32 %v1282_v6, 0.0  ;;  %v1432_v10 = vadd.f32 %v2609_v1, %v1431_v7 }
 0x1a1   : > { %1501 = vst [vmem:[%s2612_s7 + $0x38] sm:$0xff] %v1432_v10  ;;  %v1333_v11 = vpack.c.bf16 %v1314_v9, %v1313_v8 }
 0x1a2   : > { %v1139_v12 = vpop.f32.mrf.mxu2  ;;  %v963_v14 = vpop.f32.mrf.mxu0 }
 0x1a3   : > { %1473 = vmatmul.bf16.gmra.mxu3 %v1333_v11  ;;  %v1052_v15 = vpop.f32.mrf.mxu1  ;;  %v1140_v17 = vadd.f32 %v1139_v12, %v1051_v13 }
 0x1a4   : > { %v1053_v19 = vadd.f32 %v1052_v15, %v963_v14 }
 0x1a5   : > { %v1283_v21 = vadd.f32 %v2543_v55, %v1140_v17 }
 0x1a6   : > { %v1434_v16 = vpop.f32.mrf.mxu3 }
 0x1a7   : > { %v1435_v18 = vadd.f32 %v2609_v1, %v1434_v16  ;;  %v1315_v27 = vmax.f32 %v1283_v21, 0.0 }
 0x1a9   : > { %1502 = vst [vmem:[%s2612_s7 + $0x40] sm:$0xff] %v1435_v18 }
 0x1aa   : > { %v1141_v20 = vpop.f32.mrf.mxu2  ;;  %v966_v23 = vpop.f32.mrf.mxu0 }
 0x1ab   : > { %v1142_v22 = vadd.f32 %v1141_v20, %v1053_v19  ;;  %v1055_v24 = vpop.f32.mrf.mxu1 }
 0x1ac   : > { %v1056_v32 = vadd.f32 %v1055_v24, %v966_v23 }
 0x1ad   : > { %v1284_v25 = vadd.f32 %v2543_v55, %v1142_v22 }
 0x1ae   : > { %v1436_v26 = vpop.f32.mrf.mxu3 }
 0x1af   : > { %v1316_v28 = vmax.f32 %v1284_v25, 0.0  ;;  %v1437_v29 = vadd.f32 %v2609_v1, %v1436_v26 }
 0x1b1   : > { %1503 = vst [vmem:[%s2612_s7 + $0x48] sm:$0xff] %v1437_v29  ;;  %v1334_v30 = vpack.c.bf16 %v1316_v28, %v1315_v27 }
 0x1b2   : > { %v1144_v31 = vpop.f32.mrf.mxu2  ;;  %v968_v33 = vpop.f32.mrf.mxu0 }
 0x1b3   : > { %1478 = vmatmul.bf16.gmra.mxu3 %v1334_v30  ;;  %v1057_v34 = vpop.f32.mrf.mxu1  ;;  %v1145_v36 = vadd.f32 %v1144_v31, %v1056_v32 }
 0x1b4   : > { %v1058_v38 = vadd.f32 %v1057_v34, %v968_v33 }
 0x1b5   : > { %v1285_v40 = vadd.f32 %v2543_v55, %v1145_v36 }
 0x1b6   : > { %v1439_v35 = vpop.f32.mrf.mxu3 }
 0x1b7   : > { %v1440_v37 = vadd.f32 %v2609_v1, %v1439_v35  ;;  %v1317_v46 = vmax.f32 %v1285_v40, 0.0 }
 0x1b9   : > { %1504 = vst [vmem:[%s2612_s7 + $0x50] sm:$0xff] %v1440_v37 }
 0x1ba   : > { %v1146_v39 = vpop.f32.mrf.mxu2  ;;  %v971_v42 = vpop.f32.mrf.mxu0 }
 0x1bb   : > { %v1147_v41 = vadd.f32 %v1146_v39, %v1058_v38  ;;  %v1060_v43 = vpop.f32.mrf.mxu1 }
 0x1bc   : > { %v1061_v51 = vadd.f32 %v1060_v43, %v971_v42 }
 0x1bd   : > { %v1286_v44 = vadd.f32 %v2543_v55, %v1147_v41 }
 0x1be   : > { %v1441_v45 = vpop.f32.mrf.mxu3 }
 0x1bf   : > { %v1318_v47 = vmax.f32 %v1286_v44, 0.0  ;;  %v1442_v48 = vadd.f32 %v2609_v1, %v1441_v45 }
 0x1c1   : > { %1505 = vst [vmem:[%s2612_s7 + $0x58] sm:$0xff] %v1442_v48  ;;  %v1335_v49 = vpack.c.bf16 %v1318_v47, %v1317_v46 }
 0x1c2   : > { %v1149_v50 = vpop.f32.mrf.mxu2  ;;  %v973_v52 = vpop.f32.mrf.mxu0 }
 0x1c3   : > { %1483 = vmatmul.bf16.gmra.mxu3 %v1335_v49  ;;  %v1062_v53 = vpop.f32.mrf.mxu1  ;;  %v1150_v56 = vadd.f32 %v1149_v50, %v1061_v51 }
 0x1c4   : > { %v1063_v58 = vadd.f32 %v1062_v53, %v973_v52 }
 0x1c5   : > { %v1287_v60 = vadd.f32 %v2543_v55, %v1150_v56 }
 0x1c6   : > { %v1444_v54 = vpop.f32.mrf.mxu3 }
 0x1c7   : > { %v1445_v57 = vadd.f32 %v2609_v1, %v1444_v54  ;;  %v1319_v0 = vmax.f32 %v1287_v60, 0.0 }
 0x1c9   : > { %1506 = vst [vmem:[%s2612_s7 + $0x60] sm:$0xff] %v1445_v57 }
 0x1ca   : > { %v1151_v59 = vpop.f32.mrf.mxu2 }
 0x1cb   : > { %v1152_v61 = vadd.f32 %v1151_v59, %v1063_v58 }
 0x1cd   : > { %v1288_v62 = vadd.f32 %v2543_v55, %v1152_v61 }
 0x1ce   : > { %v1446_v63 = vpop.f32.mrf.mxu3 }
 0x1cf   : > { %v1320_v2 = vmax.f32 %v1288_v62, 0.0  ;;  %v1447_v3 = vadd.f32 %v2609_v1, %v1446_v63 }
 0x1d1   : > { %1507 = vst [vmem:[%s2612_s7 + $0x68] sm:$0xff] %v1447_v3  ;;  %v1336_v4 = vpack.c.bf16 %v1320_v2, %v1319_v0 }
 0x1d3   : > { %1488 = vmatmul.bf16.gmra.mxu3 %v1336_v4 }
 0x1d6   : > { %v1449_v5 = vpop.f32.mrf.mxu3 }
 0x1d7   : > { %v1450_v6 = vadd.f32 %v2609_v1, %v1449_v5 }
 0x1d9   : > { %1508 = vst [vmem:[%s2612_s7 + $0x70] sm:$0xff] %v1450_v6 }
 0x1de   : > { %v1451_v7 = vpop.f32.mrf.mxu3 }
 0x1df   : > { %v1452_v8 = vadd.f32 %v2609_v1, %v1451_v7 }
 0x1e1   : > { %1509 = vst [vmem:[%s2612_s7 + $0x78] sm:$0xff] %v1452_v8 }
 0x1e6   : > { %v1454_v55 = vpop.f32.mrf.mxu3 }
 0x1e7   : > { %v1455_v9 = vadd.f32 %v2609_v1, %v1454_v55 }
 0x1e9   : > { %1510 = vst [vmem:[%s2612_s7 + $0x80] sm:$0xff] %v1455_v9 }
 0x1ee   : > { %v1456_v10 = vpop.f32.mrf.mxu3 }
 0x1ef   : > { %v1457_v11 = vadd.f32 %v2609_v1, %v1456_v10 }
 0x1f1   : > { %1511 = vst [vmem:[%s2612_s7 + $0x88] sm:$0xff] %v1457_v11 }
 0x1f6   : > { %v1459_v12 = vpop.f32.mrf.mxu3 }
 0x1f7   : > { %v1460_v13 = vadd.f32 %v2609_v1, %v1459_v12 }
 0x1f9   : > { %1512 = vst [vmem:[%s2612_s7 + $0x90] sm:$0xff] %v1460_v13 }
 0x1fe   : > { %v1461_v14 = vpop.f32.mrf.mxu3 }
 0x1ff   : > { %v1462_v15 = vadd.f32 %v2609_v1, %v1461_v14 }
 0x201   : > { %1513 = vst [vmem:[%s2612_s7 + $0x98] sm:$0xff] %v1462_v15 }
 0x206   : > { %v1464_v16 = vpop.f32.mrf.mxu3 }
 0x207   : > { %v1465_v17 = vadd.f32 %v2609_v1, %v1464_v16 }
 0x209   : > { %1514 = vst [vmem:[%s2612_s7 + $0xa0] sm:$0xff] %v1465_v17 }
 0x20e   : > { %v1466_v18 = vpop.f32.mrf.mxu3 }
 0x20f   : > { %v1467_v19 = vadd.f32 %v2609_v1, %v1466_v18 }
 0x211   : > { %1515 = vst [vmem:[%s2612_s7 + $0xa8] sm:$0xff] %v1467_v19 }
 0x216   : > { %v1469_v20 = vpop.f32.mrf.mxu3 }
 0x217   : > { %v1470_v21 = vadd.f32 %v2609_v1, %v1469_v20 }
 0x219   : > { %1516 = vst [vmem:[%s2612_s7 + $0xb0] sm:$0xff] %v1470_v21 }
 0x21e   : > { %v1471_v22 = vpop.f32.mrf.mxu3 }
 0x21f   : > { %v1472_v23 = vadd.f32 %v2609_v1, %v1471_v22 }
 0x221   : > { %1517 = vst [vmem:[%s2612_s7 + $0xb8] sm:$0xff] %v1472_v23 }
 0x226   : > { %v1474_v24 = vpop.f32.mrf.mxu3 }
 0x227   : > { %v1475_v25 = vadd.f32 %v2609_v1, %v1474_v24 }
 0x229   : > { %1518 = vst [vmem:[%s2612_s7 + $0xc0] sm:$0xff] %v1475_v25 }
 0x22e   : > { %v1476_v26 = vpop.f32.mrf.mxu3 }
 0x22f   : > { %v1477_v27 = vadd.f32 %v2609_v1, %v1476_v26 }
 0x231   : > { %1519 = vst [vmem:[%s2612_s7 + $0xc8] sm:$0xff] %v1477_v27 }
 0x236   : > { %v1479_v28 = vpop.f32.mrf.mxu3 }
 0x237   : > { %v1480_v29 = vadd.f32 %v2609_v1, %v1479_v28 }
 0x239   : > { %1520 = vst [vmem:[%s2612_s7 + $0xd0] sm:$0xff] %v1480_v29 }
 0x23e   : > { %v1481_v30 = vpop.f32.mrf.mxu3 }
 0x23f   : > { %v1482_v31 = vadd.f32 %v2609_v1, %v1481_v30 }
 0x241   : > { %1521 = vst [vmem:[%s2612_s7 + $0xd8] sm:$0xff] %v1482_v31 }
 0x246   : > { %v1484_v32 = vpop.f32.mrf.mxu3 }
 0x247   : > { %v1485_v33 = vadd.f32 %v2609_v1, %v1484_v32 }
 0x249   : > { %1522 = vst [vmem:[%s2612_s7 + $0xe0] sm:$0xff] %v1485_v33 }
 0x24e   : > { %v1486_v34 = vpop.f32.mrf.mxu3 }
 0x24f   : > { %v1487_v35 = vadd.f32 %v2609_v1, %v1486_v34 }
 0x251   : > { %1523 = vst [vmem:[%s2612_s7 + $0xe8] sm:$0xff] %v1487_v35 }
 0x256   : > { %v1489_v36 = vpop.f32.mrf.mxu3 }
 0x257   : > { %v1490_v37 = vadd.f32 %v2609_v1, %v1489_v36 }
 0x259   : > { %1524 = vst [vmem:[%s2612_s7 + $0xf0] sm:$0xff] %v1490_v37 }
 0x25e   : > { %v1491_v38 = vpop.f32.mrf.mxu3 }
 0x25f   : > { %v1492_v39 = vadd.f32 %v2609_v1, %v1491_v38 }
 0x261   : > { %1525 = vst [vmem:[%s2612_s7 + $0xf8] sm:$0xff] %v1492_v39 }
 0x262   : > { %2277 = shalt.err (!%p2274_p0)
}
 0x263   : > { %s2344_s25 = smov 128   ;;  %s2345_s28 = smov 8  }
 0x264   : > { %2079 = dma.vmem_to_hbm [thread:$0]  (%p2455_p7), %s1540_s16, 4096, %s1542_s27, %s1527_s17, %s2344_s25, %s2344_s25, %s2345_s28  }
 0x265 PF: > { %s1556_s8 = sand.u32 1, %s2316_s18   ;;  %p2093_p3 = pnand %p1652_p11, %p2425_p6 }
 0x266   : > { %s1557_s7 = scalar_lea.sflag [#allocation5], %s1556_s8 }
 0x267   : > { %p2094_p5 = pneg %p2093_p3 }
 0x269   : > { %2311 = dma.done.wait (%p2094_p5), %s1557_s7, 4096  }
 0x26a   : > { %2313 = vsyncadd (%p2094_p5), %s1557_s7, 4294963200  ;;  %s22_s23 = sadd.s32 1, %s2336_s23   ;;  %s2746_s18 = smov %s2320_s19 }
 0x26b   : > { %p19_p9 = scmp.ge.s32.totalorder %s22_s23, 4   ;;  %s2747_s19 = smov %s2324_s20 }
 0x26c   : > { %s2748_s20 = smov %s2463_s10  ;;  %s2749_s21 = smov %s2332_s22 }
 0x26d   : > { %s2750_s22 = smov %s2752_s24  ;;  %21 = sbr.rel (!%p19_p9) target bundleno = 10 (0xa), region = 102 }
 0x272   :  { %1563 = vsyncpa [#allocation4], 1 }
 0x273   :  { %1565 = vsyncpa [#allocation4 + $0x1], 1 }
 0x274   :  { %1566 = vsyncpa [#allocation7], 1 }
 0x275   :  { %1567 = vsyncpa [#allocation5], 1 }
 0x276   :  { %1569 = vsyncpa [#allocation5 + $0x1], 1 }

</bundles_post_ra>
